<compile_context>
chip_gen: v7x
topology: tpu7x:2x2x1
jax: 0.10.0
libtpu: 0.0.40
codegen_flags: <defaults>
</compile_context>

<pallas_src>
import functools
import math

import jax
import jax.numpy as jnp
from jax import lax
from jax.experimental import pallas as pl
from jax.experimental.pallas import tpu as pltpu

LANE = 128          # TPU lane width; all feature dims are padded into it
_BIAS_ROWS = 8      # one (8,128) sublane tile holding b1, b2, b3, wf, bf


def _round_up(x, m):
    return ((x + m - 1) // m) * m


# -----------------------------------------------------------------------------
# Fused Critic kernel (one batch tile per grid step)
# -----------------------------------------------------------------------------
def _critic_kernel(xa_ref, p_ref, out_ref, *, h0):
    xa = xa_ref[...]                       # (TB, 128): [state | action | 0]

    # Static, tile-aligned views into the packed parameter buffer.
    w1 = p_ref[0 * LANE:1 * LANE, :]       # (128,128)  W1 + action pass-through
    w2 = p_ref[1 * LANE:2 * LANE, :]       # (128,128)  fused [W2_x ; W2_a]
    w3 = p_ref[2 * LANE:3 * LANE, :]       # (128,128)  W3
    r = 3 * LANE
    b1 = p_ref[r + 0:r + 1, :]             # (1,128)
    b2 = p_ref[r + 1:r + 2, :]
    b3 = p_ref[r + 2:r + 3, :]
    wf = p_ref[r + 3:r + 4, :]             # head weight as a lane row
    bf = p_ref[r + 4:r + 5, :][:, 0:1]     # head bias, (1,1)

    # Layer 1 + implicit concat: the identity block inside w1 forwards the
    # action lanes to columns [h0, h0+ad), so ReLU must only hit lanes < h0.
    y1 = jnp.dot(xa, w1, preferred_element_type=jnp.float32)
    lane = lax.broadcasted_iota(jnp.int32, y1.shape, 1)
    x = jnp.where(lane < h0, jnp.maximum(y1 + b1, 0.0), y1)

    # Layer 2: ReLU(x_cat @ W2 + b2)   (single MXU pass, fused weight)
    x = jnp.maximum(jnp.dot(x, w2, preferred_element_type=jnp.float32) + b2, 0.0)

    # Layer 3: ReLU(x @ W3 + b3)
    x = jnp.maximum(jnp.dot(x, w3, preferred_element_type=jnp.float32) + b3, 0.0)

    # Head (h2 -> 1): VPU multiply + lane reduction instead of an N=1 MXU pass.
    out_ref[...] = jnp.sum(x * wf, axis=-1, keepdims=True) + bf


# -----------------------------------------------------------------------------
# Parameter packing: all weights/biases -> one tile-padded (392, 128) buffer
# -----------------------------------------------------------------------------
def pack_critic_params(params, input_dim, action_dim, critic_dims):
    h0, h1, h2 = critic_dims
    sd, ad = input_dim, action_dim
    assert sd + ad <= LANE and h0 + ad <= LANE and h1 <= LANE and h2 <= LANE

    p = jnp.zeros((3 * LANE + _BIAS_ROWS, LANE), jnp.float32)

    # layer-1 weight + identity pass-through that carries the action forward
    p = p.at[0:sd, 0:h0].set(params["w1"])
    p = p.at[sd + jnp.arange(ad), h0 + jnp.arange(ad)].set(1.0)

    # layer-2 fused weight [W2_state ; W2_action]  (== concat, exactly)
    p = p.at[LANE:LANE + h0 + ad, 0:h1].set(params["w2"])

    # layer-3 weight
    p = p.at[2 * LANE:2 * LANE + h1, 0:h2].set(params["w3"])

    # biases + head packed into one sublane tile
    r = 3 * LANE
    p = p.at[r + 0, 0:h0].set(params["b1"])
    p = p.at[r + 1, 0:h1].set(params["b2"])
    p = p.at[r + 2, 0:h2].set(params["b3"])
    p = p.at[r + 3, 0:h2].set(params["wf"])
    p = p.at[r + 4, 0].set(params["bf"])
    return p


# -----------------------------------------------------------------------------
# Wrapper: batch-tiled pallas_call with VMEM-resident parameters
# -----------------------------------------------------------------------------
def critic_forward(state, action, packed_params, critic_dims, *, block_batch=256):
    batch, sd = state.shape
    ad = action.shape[1]
    h0 = critic_dims[0]

    tb = block_batch if batch >= block_batch else _round_up(batch, 8)
    batch_p = _round_up(batch, tb)

    # Single lane-dense input slab: [state | action | 0-pad]  -> one input DMA.
    xa = jnp.zeros((batch_p, LANE), jnp.float32)
    xa = xa.at[:batch, :sd].set(state.astype(jnp.float32))
    xa = xa.at[:batch, sd:sd + ad].set(action.astype(jnp.float32))

    pr = packed_params.shape[0]
    grid = (batch_p // tb,)

    out = pl.pallas_call(
        functools.partial(_critic_kernel, h0=h0),
        out_shape=jax.ShapeDtypeStruct((batch_p, 1), jnp.float32),
        grid_spec=pltpu.PrefetchScalarGridSpec(
            num_scalar_prefetch=0,
            grid=grid,
            in_specs=[
                pl.BlockSpec((tb, LANE), lambda i: (i, 0)),   # batch tile (pipelined)
                pl.BlockSpec((pr, LANE), lambda i: (0, 0)),   # params: resident in VMEM
            ],
            out_specs=pl.BlockSpec((tb, 1), lambda i: (i, 0)),
        ),
        compiler_params=pltpu.CompilerParams(
            dimension_semantics=("parallel",),       # shards batch across TCs on v7x
            vmem_limit_bytes=32 * 1024 * 1024,       # safe on v5e/v6e/v7x
        ),
    )(xa, packed_params)
    return out[:batch]


# -----------------------------------------------------------------------------
# Deterministic parameter init (mirrors fan_in_init / nn.Linear shapes)
# -----------------------------------------------------------------------------
def init_critic_params(key, input_dim, action_dim, critic_dims):
    h0, h1, h2 = critic_dims
    ks = jax.random.split(key, 8)

    def u(k, shape, bound):
        return jax.random.uniform(k, shape, jnp.float32, -bound, bound)

    # weights stored pre-transposed as (in_features, out_features)
    w1 = u(ks[0], (input_dim, h0), 1.0 / math.sqrt(input_dim))
    b1 = u(ks[1], (h0,), 1.0 / math.sqrt(h0))           # fan_in_init(bias) uses bias.size(-1)
    w2 = u(ks[2], (h0 + action_dim, h1), 1.0 / math.sqrt(h0 + action_dim))
    b2 = u(ks[3], (h1,), 1.0 / math.sqrt(h1))
    w3 = u(ks[4], (h1, h2), 1.0 / math.sqrt(h1))
    b3 = u(ks[5], (h2,), 1.0 / math.sqrt(h2))
    wf = u(ks[6], (h2,), 0.003)
    bf = u(ks[7], (), 0.0003)
    return dict(w1=w1, b1=b1, w2=w2, b2=b2, w3=w3, b3=b3, wf=wf, bf=bf)


# -----------------------------------------------------------------------------
# Pure-JAX reference for correctness check
# -----------------------------------------------------------------------------
def critic_reference(state, action, p):
    x = jnp.maximum(state @ p["w1"] + p["b1"], 0.0)
    x = jnp.concatenate([x, action], axis=1)
    x = jnp.maximum(x @ p["w2"] + p["b2"], 0.0)
    x = jnp.maximum(x @ p["w3"] + p["b3"], 0.0)
    return x @ p["wf"][:, None] + p["bf"]


if __name__ == "__main__":
    batch = 8
    input_dim = 16
    action_dim = 4
    critic_dims = (32, 64, 32)

    key = jax.random.PRNGKey(0)
    k_state, k_action, k_params = jax.random.split(key, 3)

    state = jax.random.normal(k_state, (batch, input_dim), jnp.float32)
    action = jax.random.normal(k_action, (batch, action_dim), jnp.float32)
    params = init_critic_params(k_params, input_dim, action_dim, critic_dims)
    packed = pack_critic_params(params, input_dim, action_dim, critic_dims)

    q = critic_forward(state, action, packed, critic_dims)
    q = jax.block_until_ready(q)

    q_ref = critic_reference(state, action, params)
    assert q.shape == (batch, 1)
    assert jnp.allclose(q, q_ref, atol=1e-5, rtol=1e-5)

    print("KERNEL_OK")
</pallas_src>

<mosaic_0001>
module attributes {stable_mosaic.version = 11 : i64} {
  func.func @_critic_kernel(%arg0: i32, %arg1: memref<8x128xf32, #tpu.memory_space<vmem>>, %arg2: memref<392x128xf32, #tpu.memory_space<vmem>>, %arg3: memref<8x1xf32, #tpu.memory_space<vmem>>) attributes {dimension_semantics = [#tpu.dimension_semantics<parallel>], iteration_bounds = array<i64: 1>, scalar_prefetch = 0 : i64, scratch_operands = 0 : i64, tpu.core_type = #tpu.core_type<tc>, window_params = [{transform_indices = @transform_0, window_bounds = array<i64: 8, 128>}, {pipeline_mode = #tpu.pipeline_mode<synchronous>, transform_indices = @transform_1, window_bounds = array<i64: 392, 128>}, {transform_indices = @transform_2, window_bounds = array<i64: 8, 1>}]} {
    %c0 = arith.constant 0 : index
    %c0_0 = arith.constant 0 : index
    %0 = vector.load %arg1[%c0, %c0_0] : memref<8x128xf32, #tpu.memory_space<vmem>>, vector<8x128xf32>
    %c0_1 = arith.constant 0 : index
    %c0_2 = arith.constant 0 : index
    %1 = vector.load %arg2[%c0_1, %c0_2] : memref<392x128xf32, #tpu.memory_space<vmem>>, vector<128x128xf32>
    %c128 = arith.constant 128 : index
    %c0_3 = arith.constant 0 : index
    %2 = vector.load %arg2[%c128, %c0_3] : memref<392x128xf32, #tpu.memory_space<vmem>>, vector<128x128xf32>
    %c256 = arith.constant 256 : index
    %c0_4 = arith.constant 0 : index
    %3 = vector.load %arg2[%c256, %c0_4] : memref<392x128xf32, #tpu.memory_space<vmem>>, vector<128x128xf32>
    %c384 = arith.constant 384 : index
    %c0_5 = arith.constant 0 : index
    %4 = vector.load %arg2[%c384, %c0_5] : memref<392x128xf32, #tpu.memory_space<vmem>>, vector<1x128xf32>
    %c385 = arith.constant 385 : index
    %c0_6 = arith.constant 0 : index
    %5 = vector.load %arg2[%c385, %c0_6] : memref<392x128xf32, #tpu.memory_space<vmem>>, vector<1x128xf32>
    %c386 = arith.constant 386 : index
    %c0_7 = arith.constant 0 : index
    %6 = vector.load %arg2[%c386, %c0_7] : memref<392x128xf32, #tpu.memory_space<vmem>>, vector<1x128xf32>
    %c387 = arith.constant 387 : index
    %c0_8 = arith.constant 0 : index
    %7 = vector.load %arg2[%c387, %c0_8] : memref<392x128xf32, #tpu.memory_space<vmem>>, vector<1x128xf32>
    %c388 = arith.constant 388 : index
    %c0_9 = arith.constant 0 : index
    %8 = vector.load %arg2[%c388, %c0_9] : memref<392x128xf32, #tpu.memory_space<vmem>>, vector<1x128xf32>
    %9 = vector.extract_strided_slice %8 {offsets = [0, 0], sizes = [1, 1], strides = [1, 1]} : vector<1x128xf32> to vector<1x1xf32>
    %cst = arith.constant dense<0.000000e+00> : vector<8x128xf32>
    %10 = tpu.matmul %0, %1, %cst {dimension_numbers = #tpu.dot_dimension_numbers<[1], [0], [0], [1], [0, 0, 1, 1], [], []>} : vector<8x128xf32>, vector<128x128xf32>, vector<8x128xf32> -> vector<8x128xf32>
    %11 = tpu.iota {dimensions = array<i32: 1>} : vector<8x128xi32>
    %c32_i32 = arith.constant 32 : i32
    %12 = vector.broadcast %c32_i32 : i32 to vector<8x128xi32>
    %13 = arith.cmpi slt, %11, %12 : vector<8x128xi32>
    %14 = vector.broadcast %4 : vector<1x128xf32> to vector<8x128xf32>
    %15 = arith.addf %10, %14 : vector<8x128xf32>
    %cst_10 = arith.constant 0.000000e+00 : f32
    %16 = vector.broadcast %cst_10 : f32 to vector<8x128xf32>
    %17 = arith.maximumf %15, %16 : vector<8x128xf32>
    %18 = arith.select %13, %17, %10 : vector<8x128xi1>, vector<8x128xf32>
    %cst_11 = arith.constant dense<0.000000e+00> : vector<8x128xf32>
    %19 = tpu.matmul %18, %2, %cst_11 {dimension_numbers = #tpu.dot_dimension_numbers<[1], [0], [0], [1], [0, 0, 1, 1], [], []>} : vector<8x128xf32>, vector<128x128xf32>, vector<8x128xf32> -> vector<8x128xf32>
    %20 = vector.broadcast %5 : vector<1x128xf32> to vector<8x128xf32>
    %21 = arith.addf %19, %20 : vector<8x128xf32>
    %cst_12 = arith.constant 0.000000e+00 : f32
    %22 = vector.broadcast %cst_12 : f32 to vector<8x128xf32>
    %23 = arith.maximumf %21, %22 : vector<8x128xf32>
    %cst_13 = arith.constant dense<0.000000e+00> : vector<8x128xf32>
    %24 = tpu.matmul %23, %3, %cst_13 {dimension_numbers = #tpu.dot_dimension_numbers<[1], [0], [0], [1], [0, 0, 1, 1], [], []>} : vector<8x128xf32>, vector<128x128xf32>, vector<8x128xf32> -> vector<8x128xf32>
    %25 = vector.broadcast %6 : vector<1x128xf32> to vector<8x128xf32>
    %26 = arith.addf %24, %25 : vector<8x128xf32>
    %cst_14 = arith.constant 0.000000e+00 : f32
    %27 = vector.broadcast %cst_14 : f32 to vector<8x128xf32>
    %28 = arith.maximumf %26, %27 : vector<8x128xf32>
    %29 = vector.broadcast %7 : vector<1x128xf32> to vector<8x128xf32>
    %30 = arith.mulf %28, %29 : vector<8x128xf32>
    %cst_15 = arith.constant dense<0.000000e+00> : vector<8xf32>
    %31 = vector.multi_reduction <add>, %30, %cst_15 [1] : vector<8x128xf32> to vector<8xf32>
    %32 = vector.shape_cast %31 : vector<8xf32> to vector<8x1xf32>
    %33 = vector.broadcast %9 : vector<1x1xf32> to vector<8x1xf32>
    %34 = arith.addf %32, %33 : vector<8x1xf32>
    %c0_16 = arith.constant 0 : index
    %c0_17 = arith.constant 0 : index
    %35 = vector.load %arg3[%c0_16, %c0_17] : memref<8x1xf32, #tpu.memory_space<vmem>>, vector<8x1xf32>
    tpu.vector_store %arg3[%c0_16, %c0_17], %34 {strides = array<i32>} : memref<8x1xf32, #tpu.memory_space<vmem>>, vector<8x1xf32>,
    return
  }
  func.func @transform_0(%arg0: i32) -> (i32, i32) {
    %c0_i32 = arith.constant 0 : i32
    %c0_i32_0 = arith.constant 0 : i32
    return %arg0, %c0_i32 : i32, i32
  }
  func.func @transform_1(%arg0: i32) -> (i32, i32) {
    %c0_i32 = arith.constant 0 : i32
    %c0_i32_0 = arith.constant 0 : i32
    %c0_i32_1 = arith.constant 0 : i32
    return %c0_i32, %c0_i32_0 : i32, i32
  }
  func.func @transform_2(%arg0: i32) -> (i32, i32) {
    %c0_i32 = arith.constant 0 : i32
    %c0_i32_0 = arith.constant 0 : i32
    return %arg0, %c0_i32 : i32, i32
  }
}

</mosaic_0001>

<bundles_post_ra>
// kernel: tpu_custom_call.1
= control target key start
LH: loop header
LB: loop body
LE: loop exit
PB: predicated region body
PF: predicated region fallthrough
CT: control target
= control target key end

     0   :  { %7 = vsyncpa [#allocation3], 0  ;;  %s715_s0 = inlined_call_operand.hbm [shape: f32[8,128], index: 0, kind: input, shape index: {}]   ;;  %s716_s1 = inlined_call_operand.hbm [shape: f32[392,128], index: 1, kind: input, shape index: {}]   ;;  %s717_s2 = inlined_call_operand.vmem [shape: f32[8,1], index: 2, kind: output, shape index: {}]  }
   0x1   :  { %8 = vsyncpa [#allocation5], 0  ;;  %s629_s9 = smov [#allocation2]   ;;  %s630_s11 = smov [#allocation4]  }
   0x2   :  { %s15_s10 = sshll.u32 %s629_s9, 4  ;;  %s24_s12 = sshll.u32 %s630_s11, 4  ;;  %s16_s10 = int_to_ptr.vmem [resolvable:$true] %s15_s10  ;;  %s651_s12 = int_to_ptr.vmem [resolvable:$true] %s24_s12 }
   0x3   :  { %s581_s15 = scalar_lea.hbm %s715_s0, 128 }
   0x4   :  { %p582_p0 = scmp.ne.s32.totalorder %s715_s0, %s581_s15  ;;  %p585_p1 = scmp.lt.u32.totalorder %s581_s15, %s715_s0 }
   0x6   :  { %p587_p2 = pnand %p585_p1, %p582_p0 }
   0x8   :  { %590 = shalt.err (!%p587_p2)
}
   0x9   :  { %s591_s20 = scalar_lea.vmem %s16_s10, 128  ;;  %p596_p4 = scmp.lt.s32.totalorder %s16_s10, %s16_s10 }
   0xa   :  { %p592_p3 = scmp.ne.s32.totalorder %s16_s10, %s591_s20  ;;  %p597_p5 = scmp.lt.s32.totalorder %s591_s20, %s591_s20 }
   0xc   :  { %p598_p6 = por %p597_p5, %p596_p4 }
   0xe   :  { %p599_p7 = pnand %p598_p6, %p592_p3 }
  0x10   :  { %602 = shalt.err (!%p599_p7)
}
  0x11   :  { %18 = dma.hbm_to_vmem [thread:$0]  %s715_s0, 128, %s16_s10, [#allocation3]  }
  0x12   :  { %s603_s25 = scalar_lea.hbm %s716_s1, 6272 }
  0x13   :  { %p604_p8 = scmp.ne.s32.totalorder %s716_s1, %s603_s25  ;;  %p607_p9 = scmp.lt.u32.totalorder %s603_s25, %s716_s1 }
  0x15   :  { %p609_p10 = pnand %p607_p9, %p604_p8 }
  0x17   :  { %612 = shalt.err (!%p609_p10)
}
  0x18   :  { %s613_s30 = scalar_lea.vmem %s651_s12, 6272  ;;  %p618_p12 = scmp.lt.s32.totalorder %s651_s12, %s651_s12 }
  0x19   :  { %p614_p11 = scmp.ne.s32.totalorder %s651_s12, %s613_s30  ;;  %p619_p13 = scmp.lt.s32.totalorder %s613_s30, %s613_s30 }
  0x1b   :  { %p620_p0 = por %p619_p13, %p618_p12 }
  0x1d   :  { %p621_p1 = pnand %p620_p0, %p614_p11 }
  0x1f   :  { %624 = shalt.err (!%p621_p1)
}
  0x20   :  { %s631_s0 = smov 128   ;;  %s632_s3 = smov 8  }
  0x21   :  { %30 = dma.hbm_to_vmem [thread:$0]  %s716_s1, 6272, %s651_s12, [#allocation5], %s631_s0, %s631_s0, %s632_s3  }
  0x22   :  { %625 = dma.done.wait [#allocation3], 128  }
  0x23   :  { %626 = vsyncadd [#allocation3], 4294967168 }
  0x24   :  { %627 = dma.done.wait [#allocation5], 6272  }
  0x25   :  { %628 = vsyncadd [#allocation5], 4294961024  ;;  %v633_v0 = vmov 0.0|0.0   ;;  %vm634_vm0 = vmmov 0   ;;  %v635_v1 = vmov 0.0   ;;  %v38_v2 = vld [vmem:[#allocation4] sm:$0xff] }
  0x26   :  { %502 = vmatprep.subr.bf16.mxu0 %v633_v0  ;;  %429 = vmatprep.mubr.msk.f32.mxu0 %vm634_vm0, %v635_v1  ;;  %v39_v3 = vld [vmem:[#allocation4 + $0x8] sm:$0xff]  ;;  %v40_v4 = vld [vmem:[#allocation4 + $0x10] sm:$0xff]  ;;  %v41_v6 = vld [vmem:[#allocation4 + $0x18] sm:$0xff]  ;;  %vm333_vm2 = vcmask 7168  }
  0x27   :  { %526 = vmatprep.subr.bf16.mxu1 %v633_v0  ;;  %464 = vmatprep.mubr.msk.f32.mxu1 %vm634_vm0, %v635_v1  ;;  %v503_v5 = vpack.c.bf16 %v39_v3, %v38_v2  ;;  %v506_v7 = vpack.c.bf16 %v41_v6, %v40_v4  ;;  %v42_v8 = vld [vmem:[#allocation4 + $0x20] sm:$0xff]  ;;  %v43_v9 = vld [vmem:[#allocation4 + $0x28] sm:$0xff]  ;;  %v56_v12 = vld [vmem:[#allocation4 + $0x90] sm:$0xff] }
  0x28   :  { %v54_v10 = vld [vmem:[#allocation4 + $0x80] sm:$0xff]  ;;  %v55_v11 = vld [vmem:[#allocation4 + $0x88] sm:$0xff]  ;;  %v57_v13 = vld [vmem:[#allocation4 + $0x98] sm:$0xff]  ;;  %v509_v14 = vpack.c.bf16 %v43_v9, %v42_v8  ;;  %v161_v9 = vlaneseq }
  0x29   :  { %504 = vmatpush3.bf16.msra.mxu0 %v503_v5  ;;  %v527_v15 = vpack.c.bf16 %v55_v11, %v54_v10  ;;  %v44_v16 = vld [vmem:[#allocation4 + $0x30] sm:$0xff]  ;;  %v45_v17 = vld [vmem:[#allocation4 + $0x38] sm:$0xff]  ;;  %v530_v18 = vpack.c.bf16 %v57_v13, %v56_v12  ;;  %v58_v19 = vld [vmem:[#allocation4 + $0xa0] sm:$0xff] }
  0x2a   :  { %505 = vmatprep.subr.bf16.mxu0 %v633_v0  ;;  %v59_v20 = vld [vmem:[#allocation4 + $0xa8] sm:$0xff]  ;;  %v512_v21 = vpack.c.bf16 %v45_v17, %v44_v16  ;;  %v46_v22 = vld [vmem:[#allocation4 + $0x40] sm:$0xff]  ;;  %v60_v25 = vld [vmem:[#allocation4 + $0xb0] sm:$0xff]  ;;  %v162_v11 = vand.u32 127, %v161_v9 }
  0x2b   :  { %528 = vmatpush3.bf16.msra.mxu1 %v527_v15  ;;  %v47_v23 = vld [vmem:[#allocation4 + $0x48] sm:$0xff]  ;;  %v533_v24 = vpack.c.bf16 %v59_v20, %v58_v19  ;;  %v61_v26 = vld [vmem:[#allocation4 + $0xb8] sm:$0xff]  ;;  %v48_v28 = vld [vmem:[#allocation4 + $0x50] sm:$0xff] }
  0x2c   :  { %529 = vmatprep.subr.bf16.mxu1 %v633_v0  ;;  %v515_v27 = vpack.c.bf16 %v47_v23, %v46_v22  ;;  %v49_v29 = vld [vmem:[#allocation4 + $0x58] sm:$0xff]  ;;  %v536_v30 = vpack.c.bf16 %v61_v26, %v60_v25  ;;  %v62_v31 = vld [vmem:[#allocation4 + $0xc0] sm:$0xff]  ;;  %v63_v32 = vld [vmem:[#allocation4 + $0xc8] sm:$0xff]  ;;  %vm163_vm1 = vcmp.lt.s32.totalorder %v162_v11, 32 }
  0x2d   :  { %507 = vmatpush3.bf16.msra.mxu0 %v506_v7  ;;  %v518_v33 = vpack.c.bf16 %v49_v29, %v48_v28  ;;  %v50_v34 = vld [vmem:[#allocation4 + $0x60] sm:$0xff]  ;;  %v51_v35 = vld [vmem:[#allocation4 + $0x68] sm:$0xff]  ;;  %v539_v36 = vpack.c.bf16 %v63_v32, %v62_v31  ;;  %v64_v37 = vld [vmem:[#allocation4 + $0xd0] sm:$0xff] }
  0x2e   :  { %508 = vmatprep.subr.bf16.mxu0 %v633_v0  ;;  %v65_v38 = vld [vmem:[#allocation4 + $0xd8] sm:$0xff]  ;;  %v521_v39 = vpack.c.bf16 %v51_v35, %v50_v34  ;;  %v52_v40 = vld [vmem:[#allocation4 + $0x70] sm:$0xff]  ;;  %v66_v43 = vld [vmem:[#allocation4 + $0xe0] sm:$0xff] }
  0x2f   :  { %531 = vmatpush3.bf16.msra.mxu1 %v530_v18  ;;  %v53_v41 = vld [vmem:[#allocation4 + $0x78] sm:$0xff]  ;;  %v542_v42 = vpack.c.bf16 %v65_v38, %v64_v37  ;;  %v67_v44 = vld [vmem:[#allocation4 + $0xe8] sm:$0xff]  ;;  %v68_v48 = vld [vmem:[#allocation4 + $0xf0] sm:$0xff] }
  0x30   :  { %532 = vmatprep.subr.bf16.mxu1 %v633_v0  ;;  %v524_v45 = vpack.c.bf16 %v53_v41, %v52_v40  ;;  %v545_v46 = vpack.c.bf16 %v67_v44, %v66_v43  ;;  %v37_v47 = vld [vmem:[#allocation2] sm:$0xff]  ;;  %v70_v51 = vld [vmem:[#allocation4 + $0x100] sm:$0xff]  ;;  %v71_v52 = vld [vmem:[#allocation4 + $0x108] sm:$0xff] }
  0x31   :  { %510 = vmatpush3.bf16.msra.mxu0 %v509_v14  ;;  %v69_v49 = vld [vmem:[#allocation4 + $0xf8] sm:$0xff]  ;;  %v72_v53 = vld [vmem:[#allocation4 + $0x110] sm:$0xff]  ;;  %v551_v54 = vpack.c.bf16 %v71_v52, %v70_v51  ;;  %v74_v57 = vld [vmem:[#allocation4 + $0x120] sm:$0xff] }
  0x32   :  { %511 = vmatprep.subr.bf16.mxu0 %v633_v0  ;;  %v548_v50 = vpack.c.bf16 %v69_v49, %v68_v48  ;;  %v73_v55 = vld [vmem:[#allocation4 + $0x118] sm:$0xff]  ;;  %v75_v58 = vld [vmem:[#allocation4 + $0x128] sm:$0xff]  ;;  %v76_v60 = vld [vmem:[#allocation4 + $0x130] sm:$0xff] }
  0x33   :  { %534 = vmatpush3.bf16.msra.mxu1 %v533_v24  ;;  %v554_v56 = vpack.c.bf16 %v73_v55, %v72_v53  ;;  %v557_v59 = vpack.c.bf16 %v75_v58, %v74_v57  ;;  %v77_v61 = vld [vmem:[#allocation4 + $0x138] sm:$0xff]  ;;  %v78_v63 = vld [vmem:[#allocation4 + $0x140] sm:$0xff]  ;;  %v80_v3 = vld [vmem:[#allocation4 + $0x150] sm:$0xff] }
  0x34   :  { %535 = vmatprep.subr.bf16.mxu1 %v633_v0  ;;  %v560_v62 = vpack.c.bf16 %v77_v61, %v76_v60  ;;  %v81_v4 = vld [vmem:[#allocation4 + $0x158] sm:$0xff]  ;;  %v82_v6 = vld [vmem:[#allocation4 + $0x160] sm:$0xff]  ;;  %v83_v7 = vld [vmem:[#allocation4 + $0x168] sm:$0xff] }
  0x35   :  { %513 = vmatpush3.bf16.msra.mxu0 %v512_v21  ;;  %v566_v5 = vpack.c.bf16 %v81_v4, %v80_v3  ;;  %v569_v8 = vpack.c.bf16 %v83_v7, %v82_v6  ;;  %v341_v10 = vld [vmem:[#allocation4 + $0x180] ss:$0 sm:$0xff]  ;;  %v84_v17 = vld [vmem:[#allocation4 + $0x170] sm:$0xff]  ;;  %v85_v18 = vld [vmem:[#allocation4 + $0x178] sm:$0xff] }
  0x36   :  { %514 = vmatprep.subr.bf16.mxu0 %v633_v0  ;;  %v572_v19 = vpack.c.bf16 %v85_v18, %v84_v17  ;;  %v342_v20 = vld [vmem:[#allocation4 + $0x181] ss:$0 sm:$0xff]  ;;  %v344_v28 = vld [vmem:[#allocation4 + $0x183] ss:$0 sm:$0xff]  ;;  %v345_v31 = vld [vmem:[#allocation4 + $0x184] ss:$0 sm:$0xff] }
  0x37   :  { %537 = vmatpush3.bf16.msra.mxu1 %v536_v30 }
  0x38   :  { %538 = vmatprep.subr.bf16.mxu1 %v633_v0 }
  0x39   :  { %516 = vmatpush3.bf16.msra.mxu0 %v515_v27 }
  0x3a   :  { %517 = vmatprep.subr.bf16.mxu0 %v633_v0 }
  0x3b   :  { %540 = vmatpush3.bf16.msra.mxu1 %v539_v36 }
  0x3c   :  { %541 = vmatprep.subr.bf16.mxu1 %v633_v0 }
  0x3d   :  { %519 = vmatpush3.bf16.msra.mxu0 %v518_v33 }
  0x3e   :  { %520 = vmatprep.subr.bf16.mxu0 %v633_v0 }
  0x3f   :  { %543 = vmatpush3.bf16.msra.mxu1 %v542_v42 }
  0x40   :  { %544 = vmatprep.subr.bf16.mxu1 %v633_v0 }
  0x41   :  { %522 = vmatpush3.bf16.msra.mxu0 %v521_v39 }
  0x42   :  { %523 = vmatprep.subr.bf16.mxu0 %v633_v0 }
  0x43   :  { %546 = vmatpush3.bf16.msra.mxu1 %v545_v46 }
  0x44   :  { %547 = vmatprep.subr.bf16.mxu1 %v633_v0 }
  0x45   :  { %525 = vmatpush3.bf16.msra.mxu0 %v524_v45 }
  0x46   :  { %550 = vmatprep.subr.bf16.mxu0 %v633_v0 }
  0x47   :  { %549 = vmatpush3.bf16.msra.mxu1 %v548_v50 }
  0x48   :  { %430 = vmatmul.mubr.f32.vlgmr.msra.gmra.mrb[0].mxu0 %v37_v47 }
  0x49   :  { %499 = vmatprep.mubr.msk.f32.mxu0 %vm634_vm0, %v635_v1  ;;  %552 = vmatpush3.bf16.msra.mxu0 %v551_v54  ;;  %v79_v1 = vld [vmem:[#allocation4 + $0x148] sm:$0xff] }
  0x4a   :  { %553 = vmatprep.subr.bf16.mxu0 %v633_v0  ;;  %v563_v2 = vpack.c.bf16 %v79_v1, %v78_v63 }
  0x4d   :  { %555 = vmatpush3.bf16.msra.mxu0 %v554_v56 }
  0x4e   :  { %556 = vmatprep.subr.bf16.mxu0 %v633_v0 }
  0x51   :  { %558 = vmatpush3.bf16.msra.mxu0 %v557_v59 }
  0x52   :  { %559 = vmatprep.subr.bf16.mxu0 %v633_v0 }
  0x55   :  { %561 = vmatpush3.bf16.msra.mxu0 %v560_v62 }
  0x56   :  { %562 = vmatprep.subr.bf16.mxu0 %v633_v0 }
  0x59   :  { %564 = vmatpush3.bf16.msra.mxu0 %v563_v2 }
  0x5a   :  { %565 = vmatprep.subr.bf16.mxu0 %v633_v0 }
  0x5d   :  { %567 = vmatpush3.bf16.msra.mxu0 %v566_v5 }
  0x5e   :  { %568 = vmatprep.subr.bf16.mxu0 %v633_v0 }
  0x61   :  { %570 = vmatpush3.bf16.msra.mxu0 %v569_v8 }
  0x62   :  { %571 = vmatprep.subr.bf16.mxu0 %v633_v0  ;;  %v343_v0 = vld [vmem:[#allocation4 + $0x182] ss:$0 sm:$0xff] }
  0x65   :  { %573 = vmatpush3.bf16.msra.mxu0 %v572_v19 }
 0x11b   :  { %v157_v12 = vpop.f32.mrb[0].mxu0 }
 0x11c   :  { %v168_v13 = vadd.f32 %v341_v10, %v157_v12  ;;  %v431_v14 = vpop.f32.mrb[1].mxu0 }
 0x11e   :  { %v169_v15 = vmax.f32 %v168_v13, 0.0 }
 0x120   :  { %v170_v16 = vsel %vm163_vm1, %v169_v15, %v157_v12 }
 0x121   :  { %465 = vmatmul.mubr.f32.vlgmr.msra.gmra.mrb[0].mxu1 %v170_v16 }
 0x1f4   :  { %v241_v21 = vpop.f32.mrb[0].mxu1 }
 0x1f5   :  { %v242_v22 = vadd.f32 %v342_v20, %v241_v21  ;;  %v466_v23 = vpop.f32.mrb[1].mxu1 }
 0x1f7   :  { %v245_v24 = vmax.f32 %v242_v22, 0.0 }
 0x1f9   :  { %500 = vmatmul.mubr.f32.vlgmr.msra.gmra.mrb[2].mxu0 %v245_v24 }
 0x2cc   :  { %v316_v25 = vpop.f32.mrb[2].mxu0 }
 0x2cd   :  { %v317_v26 = vadd.f32 %v343_v0, %v316_v25  ;;  %v501_v27 = vpop.f32.mrb[3].mxu0 }
 0x2cf   :  { %v320_v29 = vmax.f32 %v317_v26, 0.0 }
 0x2d1   :  { %v325_v30 = vmul.f32 %v344_v28, %v320_v29 }
 0x2d3   :  { %326 = vadd.xlane.f32.xlu0 %v325_v30 }
 0x360   :  { %v327_v32 = vpop.xlane.xlu0 %326 }
 0x361   :  { %v332_v33 = vadd.f32 %v345_v31, %v327_v32 }
 0x363   :  { %334 = vst.msk [vmem:[%s717_s2] sm:$0xff] %vm333_vm2, %v332_v33 }
 0x364   :  { %339 = vsyncpa [#allocation3], 1 }
 0x365   :  { %340 = vsyncpa [#allocation5], 1 }

</bundles_post_ra>
